<compile_context>
chip_gen: v7x
topology: tpu7x:2x2x1
jax: 0.10.0
libtpu: 0.0.40
codegen_flags: <defaults>
</compile_context>

<pallas_src>
import functools

import jax
import jax.numpy as jnp
from jax import lax
from jax.experimental import pallas as pl
from jax.experimental.pallas import tpu as pltpu

_LANES = 128
_SUB_ROWS = 512          # rows per inner chunk: 512x128 f32 = 256 KiB temporaries
_MAX_BLOCK_ROWS = 4096   # rows per grid step: 2 MiB f32 x-block (double-buffered)


def _impu_partial_sums_kernel(x_ref, t_ref, out_ref, *, rows, bm, sub, n_par):
    """Accumulates, per parallel slice, four (8,128) partial-sum tiles:
         out[0]: count of positives   (t == +1)
         out[1]: count of unlabeled   (t == -1)
         out[2]: sum over positives of sigmoid(-x)
         out[3]: sum over unlabeled of sigmoid(+x)
    """
    p = pl.program_id(0)
    j = pl.program_id(1)

    @pl.when(j == 0)
    def _init():
        out_ref[...] = jnp.zeros_like(out_ref)

    blk = j * n_par + p                 # un-clamped global block index
    base = blk * bm                     # first global row of this block
    n_sub = bm // sub                   # static
    row_iota = jax.lax.broadcasted_iota(jnp.int32, (sub, _LANES), 0)

    def step(start, carry):
        a_pos, a_unl, a_pp, a_uu = carry

        x = x_ref[pl.ds(start, sub), :]
        if x.dtype != jnp.float32:
            x = x.astype(jnp.float32)
        t = t_ref[pl.ds(start, sub), :]
        if jnp.issubdtype(t.dtype, jnp.floating):
            t_cmp = t.astype(jnp.float32)
        else:
            t_cmp = t.astype(jnp.int32)

        # Mask rows beyond the true extent (ragged last block / clamped blocks).
        valid = (base + start + row_iota) < rows
        pos = valid & (t_cmp == 1)       # t == positive  (+1)
        unl = valid & (t_cmp == -1)      # t == unlabeled (-1)

        y_pos = jax.nn.sigmoid(-x)       # loss_func(x); the only transcendental
        # loss_func(-x) = sigmoid(x) = 1 - y_pos (derived, no 2nd sigmoid)
        posf = pos.astype(jnp.float32)
        unlf = unl.astype(jnp.float32)
        pp = jnp.where(pos, y_pos, 0.0)        # pos * sigmoid(-x)
        uu = jnp.where(unl, 1.0 - y_pos, 0.0)  # unl * sigmoid(+x)

        def fold(v):
            # (sub,128) -> (8,128): sublane-aligned vreg adds on the VPU only.
            return jnp.sum(v.reshape(sub // 8, 8, _LANES), axis=0)

        return (a_pos + fold(posf), a_unl + fold(unlf),
                a_pp + fold(pp), a_uu + fold(uu))

    zero = jnp.zeros((8, _LANES), jnp.float32)
    init = (zero, zero, zero, zero)
    if n_sub == 1:
        a_pos, a_unl, a_pp, a_uu = step(0, init)
    else:
        def body(c, carry):
            return step(pl.multiple_of(c * sub, sub), carry)
        a_pos, a_unl, a_pp, a_uu = lax.fori_loop(0, n_sub, body, init)

    out_ref[0, :, :] += a_pos
    out_ref[1, :, :] += a_unl
    out_ref[2, :, :] += a_pp
    out_ref[3, :, :] += a_uu


def impu_loss(x, t, *, prior, prior_, beta=0.0, gamma=1.0, nnpu=True):
    xf = x.reshape(-1)
    if xf.dtype != jnp.float32:
        xf = xf.astype(jnp.float32)
    tf = t.reshape(-1)                  # keep the caller's (possibly narrow) dtype
    n = xf.shape[0]

    # Pad only when needed so `rows` is a multiple of 8 (whole vregs).  Padded
    # t = 0 -> neither positive nor unlabeled, contributes nothing.
    chunk = 8 * _LANES
    rem = n % chunk
    if rem:
        pad = chunk - rem
        xf = jnp.pad(xf, (0, pad))
        tf = jnp.pad(tf, (0, pad))
    rows = xf.shape[0] // _LANES
    x2 = xf.reshape(rows, _LANES)
    t2 = tf.reshape(rows, _LANES)

    if rows <= _SUB_ROWS:
        bm, sub = rows, rows            # single block, single chunk
    else:
        bm = min(_MAX_BLOCK_ROWS, (rows // _SUB_ROWS) * _SUB_ROWS)
        sub = _SUB_ROWS                 # bm is always a multiple of sub here
    nb_total = pl.cdiv(rows, bm)
    n_par = 2 if nb_total >= 2 else 1   # split row blocks across 2 TCs (v7x)
    nb = pl.cdiv(nb_total, n_par)

    def in_idx(p, j):
        # Clamp fully-out-of-range blocks; their rows are masked in-kernel.
        return (jnp.minimum(j * n_par + p, nb_total - 1), 0)

    kernel = functools.partial(_impu_partial_sums_kernel,
                               rows=rows, bm=bm, sub=sub, n_par=n_par)

    partial = pl.pallas_call(
        kernel,
        out_shape=jax.ShapeDtypeStruct((n_par * 4, 8, _LANES), jnp.float32),
        grid_spec=pltpu.PrefetchScalarGridSpec(
            num_scalar_prefetch=0,
            grid=(n_par, nb),
            in_specs=[
                pl.BlockSpec((bm, _LANES), in_idx),
                pl.BlockSpec((bm, _LANES), in_idx),
            ],
            out_specs=pl.BlockSpec((4, 8, _LANES), lambda p, j: (p, 0, 0)),
        ),
        compiler_params=pltpu.CompilerParams(
            dimension_semantics=("parallel", "arbitrary"),
            vmem_limit_bytes=32 * 1024 * 1024),
    )(x2, t2)

    # Tiny scalar epilogue in plain JAX (also combines the per-core partials).
    sums = partial.reshape(n_par, 4, 8, _LANES).sum(axis=(0, 2, 3))
    n_pos_raw = sums[0]
    n_unl_raw = sums[1]
    s_pos_ypos = sums[2]                         # sum(pos * sigmoid(-x))
    s_unl_yunl = sums[3]                         # sum(unl * sigmoid(+x))
    s_pos_yunl = n_pos_raw - s_pos_ypos          # sum(pos * sigmoid(+x)), derived

    n_pos = jnp.maximum(n_pos_raw, 1.0)
    n_unl = jnp.maximum(n_unl_raw, 1.0)

    prior = jnp.float32(prior)
    prior_ = jnp.float32(prior_)
    positive_risk = prior_ / n_pos * s_pos_ypos
    negative_risk = ((s_unl_yunl / n_unl - prior / n_pos * s_pos_yunl)
                     * (1.0 - prior_) / (1.0 - prior))
    objective = positive_risk + negative_risk
    if nnpu:
        # TODO(synk): PyTorch branches on negative_risk.item() host-side; here it
        # is a traced select with identical forward-value numerics.
        return jnp.where(negative_risk < -beta, -gamma * negative_risk, objective)
    return objective


def impu_loss_ref(x, t, *, prior, prior_, beta=0.0, gamma=1.0, nnpu=True):
    """Pure-JAX reference mirroring the PyTorch forward."""
    x = x.astype(jnp.float32)
    pos = (t == 1).astype(jnp.float32)
    unl = (t == -1).astype(jnp.float32)
    n_pos = jnp.maximum(pos.sum(), 1.0)
    n_unl = jnp.maximum(unl.sum(), 1.0)
    y_pos = jax.nn.sigmoid(-x)
    y_unl = jax.nn.sigmoid(x)
    positive_risk = (prior_ * pos / n_pos * y_pos).sum()
    negative_risk = ((unl / n_unl - prior * pos / n_pos)
                     * (1.0 - prior_) / (1.0 - prior) * y_unl).sum()
    objective = positive_risk + negative_risk
    if nnpu:
        return jnp.where(negative_risk < -beta,
                         -gamma * negative_risk, objective)
    return objective


if __name__ == "__main__":
    key = jax.random.PRNGKey(0)
    kx, kt = jax.random.split(key)

    # Small shapes consistent with a conv-style score map: NCHW = (2, 4, 16, 16).
    x = jax.random.normal(kx, (2, 4, 16, 16), dtype=jnp.float32)
    # Labels in {+1 (positive), -1 (unlabeled)}, stored as int8 to cut HBM bytes.
    t = jnp.where(jax.random.bernoulli(kt, 0.3, (2, 4, 16, 16)), 1, -1)
    t = t.astype(jnp.int8)

    prior, prior_, beta, gamma = 0.3, 0.35, 0.0, 1.0

    out = impu_loss(x, t, prior=prior, prior_=prior_, beta=beta, gamma=gamma,
                    nnpu=True)
    out = jax.block_until_ready(out)

    ref = impu_loss_ref(x, t, prior=prior, prior_=prior_, beta=beta,
                        gamma=gamma, nnpu=True)
    assert jnp.allclose(out, ref, rtol=1e-4, atol=1e-6), (out, ref)

    print("KERNEL_OK")
</pallas_src>

<mosaic_0001>
module attributes {stable_mosaic.version = 11 : i64} {
  func.func @_impu_partial_sums_kernel(%arg0: i32, %arg1: i32, %arg2: memref<16x128xf32, #tpu.memory_space<vmem>>, %arg3: memref<16x128xi8, #tpu.memory_space<vmem>>, %arg4: memref<4x8x128xf32, #tpu.memory_space<vmem>>) attributes {dimension_semantics = [#tpu.dimension_semantics<parallel>, #tpu.dimension_semantics<arbitrary>], iteration_bounds = array<i64: 1, 1>, scalar_prefetch = 0 : i64, scratch_operands = 0 : i64, tpu.core_type = #tpu.core_type<tc>, window_params = [{transform_indices = @transform_0, window_bounds = array<i64: 16, 128>}, {transform_indices = @transform_1, window_bounds = array<i64: 16, 128>}, {transform_indices = @transform_2, window_bounds = array<i64: 4, 8, 128>}]} {
    %c0_i32 = arith.constant 0 : i32
    %0 = arith.cmpi eq, %arg1, %c0_i32 : i32
    %1 = arith.extui %0 : i1 to i32
    %c0_i32_0 = arith.constant 0 : i32
    %2 = arith.cmpi ne, %1, %c0_i32_0 : i32
    scf.if %2 {
      %cst_37 = arith.constant 0.000000e+00 : f32
      %75 = vector.broadcast %cst_37 : f32 to vector<4x8x128xf32>
      %c0_38 = arith.constant 0 : index
      %c0_39 = arith.constant 0 : index
      %c0_40 = arith.constant 0 : index
      %76 = vector.load %arg4[%c0_38, %c0_39, %c0_40] : memref<4x8x128xf32, #tpu.memory_space<vmem>>, vector<4x8x128xf32>
      tpu.vector_store %arg4[%c0_38, %c0_39, %c0_40], %75 {strides = array<i32>} : memref<4x8x128xf32, #tpu.memory_space<vmem>>, vector<4x8x128xf32>,
    } else {
    }
    %c1_i32 = arith.constant 1 : i32
    %3 = arith.muli %arg1, %c1_i32 : i32
    %4 = arith.addi %3, %arg0 : i32
    %c16_i32 = arith.constant 16 : i32
    %5 = arith.muli %4, %c16_i32 : i32
    %6 = tpu.iota {dimensions = array<i32: 0>} : vector<16x128xi32>
    %cst = arith.constant 0.000000e+00 : f32
    %7 = vector.broadcast %cst : f32 to vector<8x128xf32>
    %c0 = arith.constant 0 : index
    %c0_1 = arith.constant 0 : index
    %8 = vector.load %arg2[%c0, %c0_1] : memref<16x128xf32, #tpu.memory_space<vmem>>, vector<16x128xf32>
    %c0_2 = arith.constant 0 : index
    %c0_3 = arith.constant 0 : index
    %9 = vector.load %arg3[%c0_2, %c0_3] : memref<16x128xi8, #tpu.memory_space<vmem>>, vector<16x128xi8>
    %10 = arith.extsi %9 : vector<16x128xi8> to vector<16x128xi32>
    %c0_i32_4 = arith.constant 0 : i32
    %11 = arith.addi %5, %c0_i32_4 : i32
    %12 = vector.broadcast %11 : i32 to vector<16x128xi32>
    %13 = arith.addi %12, %6 : vector<16x128xi32>
    %c16_i32_5 = arith.constant 16 : i32
    %14 = vector.broadcast %c16_i32_5 : i32 to vector<16x128xi32>
    %15 = arith.cmpi slt, %13, %14 : vector<16x128xi32>
    %c1_i32_6 = arith.constant 1 : i32
    %16 = vector.broadcast %c1_i32_6 : i32 to vector<16x128xi32>
    %17 = arith.cmpi eq, %10, %16 : vector<16x128xi32>
    %18 = arith.andi %15, %17 : vector<16x128xi1>
    %c-1_i32 = arith.constant -1 : i32
    %19 = vector.broadcast %c-1_i32 : i32 to vector<16x128xi32>
    %20 = arith.cmpi eq, %10, %19 : vector<16x128xi32>
    %21 = arith.andi %15, %20 : vector<16x128xi1>
    %cst_7 = arith.constant 0.000000e+00 : f32
    %22 = vector.broadcast %cst_7 : f32 to vector<16x128xf32>
    %23 = arith.subf %22, %8 : vector<16x128xf32>
    %24 = arith.negf %23 : vector<16x128xf32>
    %25 = math.exp %24 : vector<16x128xf32>
    %cst_8 = arith.constant 1.000000e+00 : f32
    %26 = vector.broadcast %cst_8 : f32 to vector<16x128xf32>
    %27 = arith.addf %26, %25 : vector<16x128xf32>
    %28 = arith.divf %26, %27 : vector<16x128xf32>
    %29 = arith.extui %18 : vector<16x128xi1> to vector<16x128xi32>
    %30 = arith.sitofp %29 : vector<16x128xi32> to vector<16x128xf32>
    %31 = arith.extui %21 : vector<16x128xi1> to vector<16x128xi32>
    %32 = arith.sitofp %31 : vector<16x128xi32> to vector<16x128xf32>
    %cst_9 = arith.constant 0.000000e+00 : f32
    %33 = vector.broadcast %cst_9 : f32 to vector<16x128xf32>
    %34 = arith.select %18, %28, %33 : vector<16x128xi1>, vector<16x128xf32>
    %cst_10 = arith.constant 1.000000e+00 : f32
    %35 = vector.broadcast %cst_10 : f32 to vector<16x128xf32>
    %36 = arith.subf %35, %28 : vector<16x128xf32>
    %cst_11 = arith.constant 0.000000e+00 : f32
    %37 = vector.broadcast %cst_11 : f32 to vector<16x128xf32>
    %38 = arith.select %21, %36, %37 : vector<16x128xi1>, vector<16x128xf32>
    %39 = vector.shape_cast %30 : vector<16x128xf32> to vector<2x8x128xf32>
    %cst_12 = arith.constant dense<0.000000e+00> : vector<8x128xf32>
    %40 = vector.multi_reduction <add>, %39, %cst_12 [0] : vector<2x8x128xf32> to vector<8x128xf32>
    %41 = arith.addf %7, %40 : vector<8x128xf32>
    %42 = vector.shape_cast %32 : vector<16x128xf32> to vector<2x8x128xf32>
    %cst_13 = arith.constant dense<0.000000e+00> : vector<8x128xf32>
    %43 = vector.multi_reduction <add>, %42, %cst_13 [0] : vector<2x8x128xf32> to vector<8x128xf32>
    %44 = arith.addf %7, %43 : vector<8x128xf32>
    %45 = vector.shape_cast %34 : vector<16x128xf32> to vector<2x8x128xf32>
    %cst_14 = arith.constant dense<0.000000e+00> : vector<8x128xf32>
    %46 = vector.multi_reduction <add>, %45, %cst_14 [0] : vector<2x8x128xf32> to vector<8x128xf32>
    %47 = arith.addf %7, %46 : vector<8x128xf32>
    %48 = vector.shape_cast %38 : vector<16x128xf32> to vector<2x8x128xf32>
    %cst_15 = arith.constant dense<0.000000e+00> : vector<8x128xf32>
    %49 = vector.multi_reduction <add>, %48, %cst_15 [0] : vector<2x8x128xf32> to vector<8x128xf32>
    %50 = arith.addf %7, %49 : vector<8x128xf32>
    %c0_16 = arith.constant 0 : index
    %c0_17 = arith.constant 0 : index
    %c0_18 = arith.constant 0 : index
    %51 = vector.load %arg4[%c0_16, %c0_17, %c0_18] : memref<4x8x128xf32, #tpu.memory_space<vmem>>, vector<1x8x128xf32>
    %52 = vector.shape_cast %51 : vector<1x8x128xf32> to vector<8x128xf32>
    %53 = arith.addf %52, %41 : vector<8x128xf32>
    %c0_19 = arith.constant 0 : index
    %c0_20 = arith.constant 0 : index
    %c0_21 = arith.constant 0 : index
    %54 = vector.load %arg4[%c0_19, %c0_20, %c0_21] : memref<4x8x128xf32, #tpu.memory_space<vmem>>, vector<1x8x128xf32>
    %55 = vector.shape_cast %54 : vector<1x8x128xf32> to vector<8x128xf32>
    %56 = vector.shape_cast %53 : vector<8x128xf32> to vector<1x8x128xf32>
    tpu.vector_store %arg4[%c0_19, %c0_20, %c0_21], %56 {strides = array<i32>} : memref<4x8x128xf32, #tpu.memory_space<vmem>>, vector<1x8x128xf32>,
    %c1 = arith.constant 1 : index
    %c0_22 = arith.constant 0 : index
    %c0_23 = arith.constant 0 : index
    %57 = vector.load %arg4[%c1, %c0_22, %c0_23] : memref<4x8x128xf32, #tpu.memory_space<vmem>>, vector<1x8x128xf32>
    %58 = vector.shape_cast %57 : vector<1x8x128xf32> to vector<8x128xf32>
    %59 = arith.addf %58, %44 : vector<8x128xf32>
    %c1_24 = arith.constant 1 : index
    %c0_25 = arith.constant 0 : index
    %c0_26 = arith.constant 0 : index
    %60 = vector.load %arg4[%c1_24, %c0_25, %c0_26] : memref<4x8x128xf32, #tpu.memory_space<vmem>>, vector<1x8x128xf32>
    %61 = vector.shape_cast %60 : vector<1x8x128xf32> to vector<8x128xf32>
    %62 = vector.shape_cast %59 : vector<8x128xf32> to vector<1x8x128xf32>
    tpu.vector_store %arg4[%c1_24, %c0_25, %c0_26], %62 {strides = array<i32>} : memref<4x8x128xf32, #tpu.memory_space<vmem>>, vector<1x8x128xf32>,
    %c2 = arith.constant 2 : index
    %c0_27 = arith.constant 0 : index
    %c0_28 = arith.constant 0 : index
    %63 = vector.load %arg4[%c2, %c0_27, %c0_28] : memref<4x8x128xf32, #tpu.memory_space<vmem>>, vector<1x8x128xf32>
    %64 = vector.shape_cast %63 : vector<1x8x128xf32> to vector<8x128xf32>
    %65 = arith.addf %64, %47 : vector<8x128xf32>
    %c2_29 = arith.constant 2 : index
    %c0_30 = arith.constant 0 : index
    %c0_31 = arith.constant 0 : index
    %66 = vector.load %arg4[%c2_29, %c0_30, %c0_31] : memref<4x8x128xf32, #tpu.memory_space<vmem>>, vector<1x8x128xf32>
    %67 = vector.shape_cast %66 : vector<1x8x128xf32> to vector<8x128xf32>
    %68 = vector.shape_cast %65 : vector<8x128xf32> to vector<1x8x128xf32>
    tpu.vector_store %arg4[%c2_29, %c0_30, %c0_31], %68 {strides = array<i32>} : memref<4x8x128xf32, #tpu.memory_space<vmem>>, vector<1x8x128xf32>,
    %c3 = arith.constant 3 : index
    %c0_32 = arith.constant 0 : index
    %c0_33 = arith.constant 0 : index
    %69 = vector.load %arg4[%c3, %c0_32, %c0_33] : memref<4x8x128xf32, #tpu.memory_space<vmem>>, vector<1x8x128xf32>
    %70 = vector.shape_cast %69 : vector<1x8x128xf32> to vector<8x128xf32>
    %71 = arith.addf %70, %50 : vector<8x128xf32>
    %c3_34 = arith.constant 3 : index
    %c0_35 = arith.constant 0 : index
    %c0_36 = arith.constant 0 : index
    %72 = vector.load %arg4[%c3_34, %c0_35, %c0_36] : memref<4x8x128xf32, #tpu.memory_space<vmem>>, vector<1x8x128xf32>
    %73 = vector.shape_cast %72 : vector<1x8x128xf32> to vector<8x128xf32>
    %74 = vector.shape_cast %71 : vector<8x128xf32> to vector<1x8x128xf32>
    tpu.vector_store %arg4[%c3_34, %c0_35, %c0_36], %74 {strides = array<i32>} : memref<4x8x128xf32, #tpu.memory_space<vmem>>, vector<1x8x128xf32>,
    return
  }
  func.func @transform_0(%arg0: i32, %arg1: i32) -> (i32, i32) {
    %c1_i32 = arith.constant 1 : i32
    %0 = arith.muli %arg1, %c1_i32 : i32
    %1 = arith.addi %0, %arg0 : i32
    %c0_i32 = arith.constant 0 : i32
    %2 = arith.minsi %1, %c0_i32 : i32
    %c0_i32_0 = arith.constant 0 : i32
    %c0_i32_1 = arith.constant 0 : i32
    return %2, %c0_i32_0 : i32, i32
  }
  func.func @transform_1(%arg0: i32, %arg1: i32) -> (i32, i32) {
    %c1_i32 = arith.constant 1 : i32
    %0 = arith.muli %arg1, %c1_i32 : i32
    %1 = arith.addi %0, %arg0 : i32
    %c0_i32 = arith.constant 0 : i32
    %2 = arith.minsi %1, %c0_i32 : i32
    %c0_i32_0 = arith.constant 0 : i32
    %c0_i32_1 = arith.constant 0 : i32
    return %2, %c0_i32_0 : i32, i32
  }
  func.func @transform_2(%arg0: i32, %arg1: i32) -> (i32, i32, i32) {
    %c0_i32 = arith.constant 0 : i32
    %c0_i32_0 = arith.constant 0 : i32
    %c0_i32_1 = arith.constant 0 : i32
    return %arg0, %c0_i32, %c0_i32_0 : i32, i32, i32
  }
}

</mosaic_0001>

<bundles_post_ra>
// kernel: tpu_custom_call.1
= control target key start
LH: loop header
LB: loop body
LE: loop exit
PB: predicated region body
PF: predicated region fallthrough
CT: control target
= control target key end

     0   :  { %7 = vsyncpa [#allocation3], 0  ;;  %s360_s0 = inlined_call_operand.hbm [shape: f32[16,128], index: 0, kind: input, shape index: {}]   ;;  %s361_s1 = inlined_call_operand.hbm [shape: s8[16,128], index: 1, kind: input, shape index: {}]   ;;  %s362_s2 = inlined_call_operand.hbm [shape: f32[4,8,128], index: 2, kind: output, shape index: {}]  }
   0x1   :  { %8 = vsyncpa [#allocation6], 0 }
   0x2   :  { %9 = vsyncpa [#allocation4], 0  ;;  %s263_s9 = smov [#allocation2]   ;;  %s191_s13 = scalar_lea.hbm %s360_s0, 256 }
   0x3   :  { %s21_s10 = sshll.u32 %s263_s9, 4  ;;  %p192_p0 = scmp.ne.s32.totalorder %s360_s0, %s191_s13  ;;  %s22_s10 = int_to_ptr.vmem [resolvable:$true] %s21_s10 }
   0x4   :  { %p195_p1 = scmp.lt.u32.totalorder %s191_s13, %s360_s0 }
   0x6   :  { %p197_p2 = pnand %p195_p1, %p192_p0 }
   0x8   :  { %200 = shalt.err (!%p197_p2)
}
   0x9   :  { %s201_s18 = scalar_lea.vmem %s22_s10, 256  ;;  %p206_p4 = scmp.lt.s32.totalorder %s22_s10, %s22_s10 }
   0xa   :  { %p202_p3 = scmp.ne.s32.totalorder %s22_s10, %s201_s18  ;;  %p207_p5 = scmp.lt.s32.totalorder %s201_s18, %s201_s18 }
   0xc   :  { %p208_p6 = por %p207_p5, %p206_p4 }
   0xe   :  { %p209_p7 = pnand %p208_p6, %p202_p3 }
  0x10   :  { %212 = shalt.err (!%p209_p7)
}
  0x11   :  { %s264_s19 = smov 128   ;;  %s265_s20 = smov 8  }
  0x12   :  { %27 = dma.hbm_to_vmem [thread:$0]  %s360_s0, 256, %s22_s10, [#allocation3], %s264_s19, %s264_s19, %s265_s20  }
  0x13   :  { %s266_s23 = smov [#allocation5]   ;;  %s213_s27 = scalar_lea.hbm %s361_s1, 64 }
  0x14   :  { %s39_s24 = sshll.u32 %s266_s23, 4  ;;  %p214_p8 = scmp.ne.s32.totalorder %s361_s1, %s213_s27  ;;  %s40_s24 = int_to_ptr.vmem [resolvable:$true] %s39_s24 }
  0x15   :  { %p217_p9 = scmp.lt.u32.totalorder %s213_s27, %s361_s1 }
  0x17   :  { %p219_p10 = pnand %p217_p9, %p214_p8 }
  0x19   :  { %222 = shalt.err (!%p219_p10)
}
  0x1a   :  { %s223_s4 = scalar_lea.vmem %s40_s24, 64  ;;  %p228_p12 = scmp.lt.s32.totalorder %s40_s24, %s40_s24 }
  0x1b   :  { %p224_p11 = scmp.ne.s32.totalorder %s40_s24, %s223_s4  ;;  %p229_p13 = scmp.lt.s32.totalorder %s223_s4, %s223_s4 }
  0x1d   :  { %p230_p0 = por %p229_p13, %p228_p12 }
  0x1f   :  { %p231_p1 = pnand %p230_p0, %p224_p11 }
  0x21   :  { %234 = shalt.err (!%p231_p1)
}
  0x22   :  { %s267_s0 = smov 32   ;;  %s268_s5 = smov 2  }
  0x23   :  { %45 = dma.hbm_to_vmem [thread:$0]  %s361_s1, 64, %s40_s24, [#allocation6], %s267_s0, %s267_s0, %s268_s5  }
  0x24   :  { %257 = dma.done.wait [#allocation3], 256  }
  0x25   :  { %258 = vsyncadd [#allocation3], 4294967040 }
  0x26   :  { %259 = dma.done.wait [#allocation6], 64  }
  0x27   :  { %260 = vsyncadd [#allocation6], 4294967232  ;;  %v172_v0 = vld [vmem:[#allocation5] sm:$0xf]   ;;  %v73_v1 = vld [vmem:[#allocation2] sm:$0xff]  ;;  %v269_v11 = vmov 0.0  }
  0x28   :  { %v74_v2 = vld [vmem:[#allocation2 + $0x8] sm:$0xff]  ;;  %v173_v3 = vunpack.c.0.s8 %v172_v0  ;;  %v174_v4 = vunpack.c.1.s8 %v172_v0  ;;  %v92_v5 = vsub.f32 0.0, %v73_v1  ;;  %s270_s1 = smov [#allocation7]  }
  0x29   :  { %v93_v6 = vsub.f32 0.0, %v74_v2  ;;  %s148_s8 = sshll.u32 %s270_s1, 4  ;;  %s149_s8 = int_to_ptr.vmem [resolvable:$true] %s148_s8 }
  0x2a   :  { %vm313_vm0 = vcmp.eq.s32.totalorder %v173_v3, 1  ;;  %vm317_vm1 = vcmp.eq.s32.totalorder %v174_v4, 1  ;;  %vm321_vm2 = vcmp.eq.s32.totalorder %v173_v3, 4294967295  ;;  %vm325_vm3 = vcmp.eq.s32.totalorder %v174_v4, 4294967295  ;;  %s235_s9 = scalar_lea.vmem %s149_s8, 512  ;;  %p240_p3 = scmp.lt.s32.totalorder %s149_s8, %s149_s8 }
  0x2b   :  { %v167_v12 = vsel %vm313_vm0, 1.0, %v269_v11  ;;  %v168_v13 = vsel %vm317_vm1, 1.0, %v269_v11  ;;  %v169_v14 = vsel %vm321_vm2, 1.0, %v269_v11  ;;  %v170_v15 = vsel %vm325_vm3, 1.0, %v269_v11  ;;  %p236_p2 = scmp.ne.s32.totalorder %s149_s8, %s235_s9  ;;  %p241_p4 = scmp.lt.s32.totalorder %s235_s9, %s235_s9 }
  0x2c   :  { %v120_v16 = vadd.f32 %v168_v13, %v167_v12  ;;  %v122_v17 = vadd.f32 %v170_v15, %v169_v14  ;;  %v165_v18 = vmul.f32 -1.442695, %v92_v5  ;;  %v166_v19 = vmul.f32 -1.442695, %v93_v6 }
  0x2d   :  { %p242_p5 = por %p241_p4, %p240_p3 }
  0x2e   :  { %183 = vpow2.f32 %v165_v18  ;;  %130 = vst [vmem:[#allocation7] sm:$0xff] %v120_v16  ;;  %134 = vst [vmem:[#allocation7 + $0x8] sm:$0xff] %v122_v17 }
  0x2f   :  { %185 = vpow2.f32 %v166_v19  ;;  %p243_p6 = pnand %p242_p5, %p236_p2 }
  0x38   :  { %v184_v20 = vpop.eup %183 }
  0x39   :  { %v186_v21 = vpop.eup %185  ;;  %v100_v22 = vadd.f32 1.0, %v184_v20 }
  0x3a   :  { %v101_v23 = vadd.f32 1.0, %v186_v21 }
  0x3b   :  { %187 = vrcp.f32 %v100_v22 }
  0x3c   :  { %189 = vrcp.f32 %v101_v23 }
  0x45   :  { %v188_v24 = vpop.eup %187 }
  0x46   :  { %v190_v25 = vpop.eup %189  ;;  %v114_v26 = vsel %vm313_vm0, %v188_v24, 0.0  ;;  %v116_v27 = vsub.f32 1.0, %v188_v24 }
  0x47   :  { %v115_v28 = vsel %vm317_vm1, %v190_v25, 0.0  ;;  %v117_v29 = vsub.f32 1.0, %v190_v25 }
  0x48   :  { %v124_v30 = vadd.f32 %v115_v28, %v114_v26  ;;  %v118_v31 = vsel %vm321_vm2, %v116_v27, 0.0 }
  0x49   :  { %v119_v32 = vsel %vm325_vm3, %v117_v29, 0.0 }
  0x4a   :  { %v126_v33 = vadd.f32 %v119_v32, %v118_v31  ;;  %138 = vst [vmem:[#allocation7 + $0x10] sm:$0xff] %v124_v30 }
  0x4c   :  { %142 = vst [vmem:[#allocation7 + $0x18] sm:$0xff] %v126_v33 }
  0x4d   :  { %246 = shalt.err (!%p243_p6)
}
  0x4e   :  { %s247_s12 = scalar_lea.hbm %s362_s2, 512 }
  0x4f   :  { %p248_p7 = scmp.ne.s32.totalorder %s362_s2, %s247_s12  ;;  %p251_p8 = scmp.lt.u32.totalorder %s247_s12, %s362_s2 }
  0x51   :  { %p253_p9 = pnand %p251_p8, %p248_p7 }
  0x53   :  { %256 = shalt.err (!%p253_p9)
}
  0x54   :  { %154 = dma.vmem_to_hbm [thread:$0]  %s149_s8, 512, %s362_s2, [#allocation4], %s264_s19, %s264_s19, %s265_s20  }
  0x55   :  { %261 = dma.done.wait [#allocation4], 512  }
  0x56   :  { %262 = vsyncadd [#allocation4], 4294966784 }
  0x57   :  { %158 = vsyncpa [#allocation3], 1 }
  0x58   :  { %159 = vsyncpa [#allocation6], 1 }
  0x59   :  { %160 = vsyncpa [#allocation4], 1 }

</bundles_post_ra>
